<compile_context>
chip_gen: v5e
topology: v5e:2x2
jax: 0.10.0
libtpu: 0.0.40
codegen_flags: <defaults>
</compile_context>

<pallas_src>
import functools
import math

import jax
import jax.numpy as jnp
from jax import lax
from jax.experimental import pallas as pl
from jax.experimental.pallas import tpu as pltpu

_LANES = 128
_LN_EPS = 1e-5
_SQRT_HALF = 1.0 / math.sqrt(2.0)


def _gelu_exact(x):
    # PyTorch nn.GELU() default = exact erf formulation.
    return 0.5 * x * (1.0 + lax.erf(x * _SQRT_HALF))


def _packed_mlp_kernel(x_ref, w1_ref, b1_ref, g1_ref, be1_ref,
                       w2_ref, b2_ref, g2_ref, be2_ref, gsum_ref,
                       out_ref, *, group):
    """One batch tile: (TBp, P*D_in) -> (TBp, 128), P logical rows per lane-row."""
    inv_n = 1.0 / group
    gsum = gsum_ref[...]   # (128,128) block-diag of ones: segmented sum + broadcast

    def _ln_gelu(z, gamma, beta):
        # Single-pass LayerNorm over each `group`-lane segment, then exact GELU.
        zsum = jnp.dot(z, gsum, preferred_element_type=jnp.float32)
        zsqs = jnp.dot(z * z, gsum, preferred_element_type=jnp.float32)
        mean = zsum * inv_n
        var = zsqs * inv_n - mean * mean
        inv = lax.rsqrt(var + _LN_EPS)
        zn = (z - mean) * inv * gamma + beta
        return _gelu_exact(zn)

    x = x_ref[...].astype(jnp.float32)

    # fc1 + LayerNorm + GELU   (dropout = identity, eval mode)
    h = jnp.dot(x, w1_ref[...], preferred_element_type=jnp.float32) + b1_ref[...]
    act1 = _ln_gelu(h, g1_ref[...], be1_ref[...])

    # fc2 + LayerNorm + GELU   (dropout = identity, eval mode)
    y = jnp.dot(act1, w2_ref[...], preferred_element_type=jnp.float32) + b2_ref[...]
    act2 = _ln_gelu(y, g2_ref[...], be2_ref[...])

    out_ref[...] = act2.astype(out_ref.dtype)


def _block_diag(w, reps):
    """(kin, kout) -> (reps*kin, reps*kout) block-diagonal replication."""
    kin, kout = w.shape
    eye = jnp.eye(reps, dtype=w.dtype)
    return (eye[:, None, :, None] * w[None, :, None, :]).reshape(reps * kin, reps * kout)


def _round_up(n, m):
    return ((n + m - 1) // m) * m


@jax.jit
def face_attr_mlp(x, params):
    B, d_in = x.shape
    h_dim = params["w1"].shape[1]
    e_dim = params["w2"].shape[1]
    assert h_dim == e_dim and _LANES % h_dim == 0, (
        "lane-packed path requires hidden_dim == face_attr_emb and 128 % dim == 0")
    pack = _LANES // h_dim            # logical rows packed per 128-lane row (4)
    kp = pack * d_in                  # packed fc1 contraction width (56)

    # Pad the batch so it packs into (8, 128)-aligned tiles, then pack `pack`
    # rows per lane-row via a free row-major reshape.
    b_pad = _round_up(max(B, 1), 8 * pack)
    if b_pad != B:
        x = jnp.pad(x, ((0, b_pad - B), (0, 0)))
    rp = b_pad // pack
    x_p = x.reshape(rp, kp)

    tbp = min(512, rp)                # 512 packed rows = 2048 logical rows per step
    grid = (pl.cdiv(rp, tbp),)

    # Block-diagonal weights / lane-tiled 1-D params (math unchanged).
    w1_p = _block_diag(params["w1"].astype(jnp.float32), pack)             # (kp, 128)
    w2_p = _block_diag(params["w2"].astype(jnp.float32), pack)             # (128, 128)
    gsum = _block_diag(jnp.ones((h_dim, h_dim), jnp.float32), pack)        # (128, 128)
    tile = lambda v: jnp.tile(v.astype(jnp.float32).reshape(1, -1), (1, pack))
    b1_p, g1_p, be1_p = tile(params["b1"]), tile(params["g1"]), tile(params["be1"])
    b2_p, g2_p, be2_p = tile(params["b2"]), tile(params["g2"]), tile(params["be2"])

    row_spec = pl.BlockSpec((tbp, kp), lambda i: (i, 0))
    out_spec = pl.BlockSpec((tbp, _LANES), lambda i: (i, 0))
    const2d = lambda shape: pl.BlockSpec(shape, lambda i: (0, 0))   # stays resident

    flops = 2 * rp * (kp * _LANES + _LANES * _LANES) + 8 * rp * _LANES * _LANES
    bytes_accessed = 4 * (rp * kp + rp * _LANES
                          + kp * _LANES + 3 * _LANES * _LANES + 6 * _LANES)
    cost = pl.CostEstimate(flops=int(flops),
                           transcendentals=int(2 * rp * _LANES),
                           bytes_accessed=int(bytes_accessed))

    out_p = pl.pallas_call(
        functools.partial(_packed_mlp_kernel, group=h_dim),
        out_shape=jax.ShapeDtypeStruct((rp, _LANES), jnp.float32),
        grid=grid,
        in_specs=[
            row_spec,                   # packed x
            const2d((kp, _LANES)),      # fc1 weight (block-diag)
            const2d((1, _LANES)),       # fc1 bias (lane-tiled)
            const2d((1, _LANES)),       # LN1 gamma
            const2d((1, _LANES)),       # LN1 beta
            const2d((_LANES, _LANES)),  # fc2 weight (block-diag)
            const2d((1, _LANES)),       # fc2 bias
            const2d((1, _LANES)),       # LN2 gamma
            const2d((1, _LANES)),       # LN2 beta
            const2d((_LANES, _LANES)),  # segmented-sum matrix
        ],
        out_specs=out_spec,
        compiler_params=pltpu.CompilerParams(
            dimension_semantics=("parallel",),
            vmem_limit_bytes=32 * 1024 * 1024,
        ),
        cost_estimate=cost,
    )(x_p, w1_p, b1_p, g1_p, be1_p, w2_p, b2_p, g2_p, be2_p, gsum)

    return out_p.reshape(b_pad, e_dim)[:B]


def init_params(key, face_attr_dim=14, hidden_dim=32, face_attr_emb=32):
    """Deterministic synthetic parameters (PyTorch Linear-style uniform init)."""
    k1, k2, k3, k4 = jax.random.split(key, 4)
    lim1 = 1.0 / math.sqrt(face_attr_dim)
    lim2 = 1.0 / math.sqrt(hidden_dim)
    return {
        # stored as (in, out) so the math is x @ W
        "w1": jax.random.uniform(k1, (face_attr_dim, hidden_dim), jnp.float32, -lim1, lim1),
        "b1": jax.random.uniform(k2, (1, hidden_dim), jnp.float32, -lim1, lim1),
        "g1": jnp.ones((1, hidden_dim), jnp.float32),
        "be1": jnp.zeros((1, hidden_dim), jnp.float32),
        "w2": jax.random.uniform(k3, (hidden_dim, face_attr_emb), jnp.float32, -lim2, lim2),
        "b2": jax.random.uniform(k4, (1, face_attr_emb), jnp.float32, -lim2, lim2),
        "g2": jnp.ones((1, face_attr_emb), jnp.float32),
        "be2": jnp.zeros((1, face_attr_emb), jnp.float32),
    }


def _layernorm_ref(x, gamma, beta, eps=_LN_EPS):
    mean = jnp.mean(x, axis=-1, keepdims=True)
    var = jnp.mean(jnp.square(x - mean), axis=-1, keepdims=True)
    return (x - mean) * lax.rsqrt(var + eps) * gamma + beta


def reference_forward(x, p):
    """Pure-JAX reference for correctness check (PyTorch eval-mode semantics)."""
    h = x @ p["w1"] + p["b1"]
    h = _gelu_exact(_layernorm_ref(h, p["g1"], p["be1"]))
    y = h @ p["w2"] + p["b2"]
    return _gelu_exact(_layernorm_ref(y, p["g2"], p["be2"]))


if __name__ == "__main__":
    key = jax.random.PRNGKey(0)
    kx, kp = jax.random.split(key)

    B, FACE_ATTR_DIM, HIDDEN, EMB = 8, 14, 32, 32
    x = jax.random.normal(kx, (B, FACE_ATTR_DIM), jnp.float32)
    params = init_params(kp, FACE_ATTR_DIM, HIDDEN, EMB)

    out = jax.block_until_ready(face_attr_mlp(x, params))
    ref = reference_forward(x, params)

    assert out.shape == (B, EMB), out.shape
    assert jnp.allclose(out, ref, atol=1e-4, rtol=1e-4), \
        float(jnp.max(jnp.abs(out - ref)))

    print("KERNEL_OK")
</pallas_src>

<mosaic_0001>
module attributes {stable_mosaic.version = 11 : i64} {
  func.func @_packed_mlp_kernel(%arg0: i32, %arg1: memref<8x56xf32, #tpu.memory_space<vmem>>, %arg2: memref<56x128xf32, #tpu.memory_space<vmem>>, %arg3: memref<1x128xf32, #tpu.memory_space<vmem>>, %arg4: memref<1x128xf32, #tpu.memory_space<vmem>>, %arg5: memref<1x128xf32, #tpu.memory_space<vmem>>, %arg6: memref<128x128xf32, #tpu.memory_space<vmem>>, %arg7: memref<1x128xf32, #tpu.memory_space<vmem>>, %arg8: memref<1x128xf32, #tpu.memory_space<vmem>>, %arg9: memref<1x128xf32, #tpu.memory_space<vmem>>, %arg10: memref<128x128xf32, #tpu.memory_space<vmem>>, %arg11: memref<8x128xf32, #tpu.memory_space<vmem>>) attributes {dimension_semantics = [#tpu.dimension_semantics<parallel>], iteration_bounds = array<i64: 1>, scalar_prefetch = 0 : i64, scratch_operands = 0 : i64, tpu.core_type = #tpu.core_type<tc>, window_params = [{transform_indices = @transform_0, window_bounds = array<i64: 8, 56>}, {pipeline_mode = #tpu.pipeline_mode<synchronous>, transform_indices = @transform_1, window_bounds = array<i64: 56, 128>}, {pipeline_mode = #tpu.pipeline_mode<synchronous>, transform_indices = @transform_2, window_bounds = array<i64: 1, 128>}, {pipeline_mode = #tpu.pipeline_mode<synchronous>, transform_indices = @transform_3, window_bounds = array<i64: 1, 128>}, {pipeline_mode = #tpu.pipeline_mode<synchronous>, transform_indices = @transform_4, window_bounds = array<i64: 1, 128>}, {pipeline_mode = #tpu.pipeline_mode<synchronous>, transform_indices = @transform_5, window_bounds = array<i64: 128, 128>}, {pipeline_mode = #tpu.pipeline_mode<synchronous>, transform_indices = @transform_6, window_bounds = array<i64: 1, 128>}, {pipeline_mode = #tpu.pipeline_mode<synchronous>, transform_indices = @transform_7, window_bounds = array<i64: 1, 128>}, {pipeline_mode = #tpu.pipeline_mode<synchronous>, transform_indices = @transform_8, window_bounds = array<i64: 1, 128>}, {pipeline_mode = #tpu.pipeline_mode<synchronous>, transform_indices = @transform_9, window_bounds = array<i64: 128, 128>}, {transform_indices = @transform_10, window_bounds = array<i64: 8, 128>}]} {
    %c0 = arith.constant 0 : index
    %c0_0 = arith.constant 0 : index
    %0 = vector.load %arg10[%c0, %c0_0] : memref<128x128xf32, #tpu.memory_space<vmem>>, vector<128x128xf32>
    %c0_1 = arith.constant 0 : index
    %c0_2 = arith.constant 0 : index
    %1 = vector.load %arg1[%c0_1, %c0_2] : memref<8x56xf32, #tpu.memory_space<vmem>>, vector<8x56xf32>
    %c0_3 = arith.constant 0 : index
    %c0_4 = arith.constant 0 : index
    %2 = vector.load %arg2[%c0_3, %c0_4] : memref<56x128xf32, #tpu.memory_space<vmem>>, vector<56x128xf32>
    %cst = arith.constant dense<0.000000e+00> : vector<8x128xf32>
    %3 = tpu.matmul %1, %2, %cst {dimension_numbers = #tpu.dot_dimension_numbers<[1], [0], [0], [1], [0, 0, 1, 1], [], []>} : vector<8x56xf32>, vector<56x128xf32>, vector<8x128xf32> -> vector<8x128xf32>
    %c0_5 = arith.constant 0 : index
    %c0_6 = arith.constant 0 : index
    %4 = vector.load %arg3[%c0_5, %c0_6] : memref<1x128xf32, #tpu.memory_space<vmem>>, vector<1x128xf32>
    %5 = vector.broadcast %4 : vector<1x128xf32> to vector<8x128xf32>
    %6 = arith.addf %3, %5 : vector<8x128xf32>
    %c0_7 = arith.constant 0 : index
    %c0_8 = arith.constant 0 : index
    %7 = vector.load %arg4[%c0_7, %c0_8] : memref<1x128xf32, #tpu.memory_space<vmem>>, vector<1x128xf32>
    %c0_9 = arith.constant 0 : index
    %c0_10 = arith.constant 0 : index
    %8 = vector.load %arg5[%c0_9, %c0_10] : memref<1x128xf32, #tpu.memory_space<vmem>>, vector<1x128xf32>
    %cst_11 = arith.constant dense<0.000000e+00> : vector<8x128xf32>
    %9 = tpu.matmul %6, %0, %cst_11 {dimension_numbers = #tpu.dot_dimension_numbers<[1], [0], [0], [1], [0, 0, 1, 1], [], []>} : vector<8x128xf32>, vector<128x128xf32>, vector<8x128xf32> -> vector<8x128xf32>
    %10 = arith.mulf %6, %6 : vector<8x128xf32>
    %cst_12 = arith.constant dense<0.000000e+00> : vector<8x128xf32>
    %11 = tpu.matmul %10, %0, %cst_12 {dimension_numbers = #tpu.dot_dimension_numbers<[1], [0], [0], [1], [0, 0, 1, 1], [], []>} : vector<8x128xf32>, vector<128x128xf32>, vector<8x128xf32> -> vector<8x128xf32>
    %cst_13 = arith.constant 3.125000e-02 : f32
    %12 = vector.broadcast %cst_13 : f32 to vector<8x128xf32>
    %13 = arith.mulf %9, %12 : vector<8x128xf32>
    %cst_14 = arith.constant 3.125000e-02 : f32
    %14 = vector.broadcast %cst_14 : f32 to vector<8x128xf32>
    %15 = arith.mulf %11, %14 : vector<8x128xf32>
    %16 = arith.mulf %13, %13 : vector<8x128xf32>
    %17 = arith.subf %15, %16 : vector<8x128xf32>
    %cst_15 = arith.constant 9.99999974E-6 : f32
    %18 = vector.broadcast %cst_15 : f32 to vector<8x128xf32>
    %19 = arith.addf %17, %18 : vector<8x128xf32>
    %20 = math.rsqrt %19 : vector<8x128xf32>
    %21 = arith.subf %6, %13 : vector<8x128xf32>
    %22 = arith.mulf %21, %20 : vector<8x128xf32>
    %23 = vector.broadcast %7 : vector<1x128xf32> to vector<8x128xf32>
    %24 = arith.mulf %22, %23 : vector<8x128xf32>
    %25 = vector.broadcast %8 : vector<1x128xf32> to vector<8x128xf32>
    %26 = arith.addf %24, %25 : vector<8x128xf32>
    %cst_16 = arith.constant 5.000000e-01 : f32
    %27 = vector.broadcast %cst_16 : f32 to vector<8x128xf32>
    %28 = arith.mulf %27, %26 : vector<8x128xf32>
    %cst_17 = arith.constant 0.707106769 : f32
    %29 = vector.broadcast %cst_17 : f32 to vector<8x128xf32>
    %30 = arith.mulf %26, %29 : vector<8x128xf32>
    %31 = math.erf %30 : vector<8x128xf32>
    %cst_18 = arith.constant 1.000000e+00 : f32
    %32 = vector.broadcast %cst_18 : f32 to vector<8x128xf32>
    %33 = arith.addf %32, %31 : vector<8x128xf32>
    %34 = arith.mulf %28, %33 : vector<8x128xf32>
    %c0_19 = arith.constant 0 : index
    %c0_20 = arith.constant 0 : index
    %35 = vector.load %arg6[%c0_19, %c0_20] : memref<128x128xf32, #tpu.memory_space<vmem>>, vector<128x128xf32>
    %cst_21 = arith.constant dense<0.000000e+00> : vector<8x128xf32>
    %36 = tpu.matmul %34, %35, %cst_21 {dimension_numbers = #tpu.dot_dimension_numbers<[1], [0], [0], [1], [0, 0, 1, 1], [], []>} : vector<8x128xf32>, vector<128x128xf32>, vector<8x128xf32> -> vector<8x128xf32>
    %c0_22 = arith.constant 0 : index
    %c0_23 = arith.constant 0 : index
    %37 = vector.load %arg7[%c0_22, %c0_23] : memref<1x128xf32, #tpu.memory_space<vmem>>, vector<1x128xf32>
    %38 = vector.broadcast %37 : vector<1x128xf32> to vector<8x128xf32>
    %39 = arith.addf %36, %38 : vector<8x128xf32>
    %c0_24 = arith.constant 0 : index
    %c0_25 = arith.constant 0 : index
    %40 = vector.load %arg8[%c0_24, %c0_25] : memref<1x128xf32, #tpu.memory_space<vmem>>, vector<1x128xf32>
    %c0_26 = arith.constant 0 : index
    %c0_27 = arith.constant 0 : index
    %41 = vector.load %arg9[%c0_26, %c0_27] : memref<1x128xf32, #tpu.memory_space<vmem>>, vector<1x128xf32>
    %cst_28 = arith.constant dense<0.000000e+00> : vector<8x128xf32>
    %42 = tpu.matmul %39, %0, %cst_28 {dimension_numbers = #tpu.dot_dimension_numbers<[1], [0], [0], [1], [0, 0, 1, 1], [], []>} : vector<8x128xf32>, vector<128x128xf32>, vector<8x128xf32> -> vector<8x128xf32>
    %43 = arith.mulf %39, %39 : vector<8x128xf32>
    %cst_29 = arith.constant dense<0.000000e+00> : vector<8x128xf32>
    %44 = tpu.matmul %43, %0, %cst_29 {dimension_numbers = #tpu.dot_dimension_numbers<[1], [0], [0], [1], [0, 0, 1, 1], [], []>} : vector<8x128xf32>, vector<128x128xf32>, vector<8x128xf32> -> vector<8x128xf32>
    %cst_30 = arith.constant 3.125000e-02 : f32
    %45 = vector.broadcast %cst_30 : f32 to vector<8x128xf32>
    %46 = arith.mulf %42, %45 : vector<8x128xf32>
    %cst_31 = arith.constant 3.125000e-02 : f32
    %47 = vector.broadcast %cst_31 : f32 to vector<8x128xf32>
    %48 = arith.mulf %44, %47 : vector<8x128xf32>
    %49 = arith.mulf %46, %46 : vector<8x128xf32>
    %50 = arith.subf %48, %49 : vector<8x128xf32>
    %cst_32 = arith.constant 9.99999974E-6 : f32
    %51 = vector.broadcast %cst_32 : f32 to vector<8x128xf32>
    %52 = arith.addf %50, %51 : vector<8x128xf32>
    %53 = math.rsqrt %52 : vector<8x128xf32>
    %54 = arith.subf %39, %46 : vector<8x128xf32>
    %55 = arith.mulf %54, %53 : vector<8x128xf32>
    %56 = vector.broadcast %40 : vector<1x128xf32> to vector<8x128xf32>
    %57 = arith.mulf %55, %56 : vector<8x128xf32>
    %58 = vector.broadcast %41 : vector<1x128xf32> to vector<8x128xf32>
    %59 = arith.addf %57, %58 : vector<8x128xf32>
    %cst_33 = arith.constant 5.000000e-01 : f32
    %60 = vector.broadcast %cst_33 : f32 to vector<8x128xf32>
    %61 = arith.mulf %60, %59 : vector<8x128xf32>
    %cst_34 = arith.constant 0.707106769 : f32
    %62 = vector.broadcast %cst_34 : f32 to vector<8x128xf32>
    %63 = arith.mulf %59, %62 : vector<8x128xf32>
    %64 = math.erf %63 : vector<8x128xf32>
    %cst_35 = arith.constant 1.000000e+00 : f32
    %65 = vector.broadcast %cst_35 : f32 to vector<8x128xf32>
    %66 = arith.addf %65, %64 : vector<8x128xf32>
    %67 = arith.mulf %61, %66 : vector<8x128xf32>
    %c0_36 = arith.constant 0 : index
    %c0_37 = arith.constant 0 : index
    %68 = vector.load %arg11[%c0_36, %c0_37] : memref<8x128xf32, #tpu.memory_space<vmem>>, vector<8x128xf32>
    tpu.vector_store %arg11[%c0_36, %c0_37], %67 {strides = array<i32>} : memref<8x128xf32, #tpu.memory_space<vmem>>, vector<8x128xf32>,
    return
  }
  func.func @transform_0(%arg0: i32) -> (i32, i32) {
    %c0_i32 = arith.constant 0 : i32
    %c0_i32_0 = arith.constant 0 : i32
    return %arg0, %c0_i32 : i32, i32
  }
  func.func @transform_1(%arg0: i32) -> (i32, i32) {
    %c0_i32 = arith.constant 0 : i32
    %c0_i32_0 = arith.constant 0 : i32
    %c0_i32_1 = arith.constant 0 : i32
    return %c0_i32, %c0_i32_0 : i32, i32
  }
  func.func @transform_2(%arg0: i32) -> (i32, i32) {
    %c0_i32 = arith.constant 0 : i32
    %c0_i32_0 = arith.constant 0 : i32
    %c0_i32_1 = arith.constant 0 : i32
    return %c0_i32, %c0_i32_0 : i32, i32
  }
  func.func @transform_3(%arg0: i32) -> (i32, i32) {
    %c0_i32 = arith.constant 0 : i32
    %c0_i32_0 = arith.constant 0 : i32
    %c0_i32_1 = arith.constant 0 : i32
    return %c0_i32, %c0_i32_0 : i32, i32
  }
  func.func @transform_4(%arg0: i32) -> (i32, i32) {
    %c0_i32 = arith.constant 0 : i32
    %c0_i32_0 = arith.constant 0 : i32
    %c0_i32_1 = arith.constant 0 : i32
    return %c0_i32, %c0_i32_0 : i32, i32
  }
  func.func @transform_5(%arg0: i32) -> (i32, i32) {
    %c0_i32 = arith.constant 0 : i32
    %c0_i32_0 = arith.constant 0 : i32
    %c0_i32_1 = arith.constant 0 : i32
    return %c0_i32, %c0_i32_0 : i32, i32
  }
  func.func @transform_6(%arg0: i32) -> (i32, i32) {
    %c0_i32 = arith.constant 0 : i32
    %c0_i32_0 = arith.constant 0 : i32
    %c0_i32_1 = arith.constant 0 : i32
    return %c0_i32, %c0_i32_0 : i32, i32
  }
  func.func @transform_7(%arg0: i32) -> (i32, i32) {
    %c0_i32 = arith.constant 0 : i32
    %c0_i32_0 = arith.constant 0 : i32
    %c0_i32_1 = arith.constant 0 : i32
    return %c0_i32, %c0_i32_0 : i32, i32
  }
  func.func @transform_8(%arg0: i32) -> (i32, i32) {
    %c0_i32 = arith.constant 0 : i32
    %c0_i32_0 = arith.constant 0 : i32
    %c0_i32_1 = arith.constant 0 : i32
    return %c0_i32, %c0_i32_0 : i32, i32
  }
  func.func @transform_9(%arg0: i32) -> (i32, i32) {
    %c0_i32 = arith.constant 0 : i32
    %c0_i32_0 = arith.constant 0 : i32
    %c0_i32_1 = arith.constant 0 : i32
    return %c0_i32, %c0_i32_0 : i32, i32
  }
  func.func @transform_10(%arg0: i32) -> (i32, i32) {
    %c0_i32 = arith.constant 0 : i32
    %c0_i32_0 = arith.constant 0 : i32
    return %arg0, %c0_i32 : i32, i32
  }
}

</mosaic_0001>

<bundles_post_ra>
// kernel: mul.1
= control target key start
LH: loop header
LB: loop body
LE: loop exit
PB: predicated region body
PF: predicated region fallthrough
CT: control target
= control target key end

     0   :  { %s364_s0 = inlined_call_operand.vmem [shape: f32[128,128], index: 0, kind: input, shape index: {}]   ;;  %s365_s1 = inlined_call_operand.vmem [shape: f32[128,128], index: 1, kind: input, shape index: {}]   ;;  %s366_s2 = inlined_call_operand.vmem [shape: f32[128,128], index: 2, kind: output, shape index: {}]  }
   0x1   :  { %v3_v0 = vld [vmem:[%s364_s0] sm:$0xff]  ;;  %v160_v2 = vld [vmem:[%s364_s0 + $0x8] sm:$0xff]  ;;  %v163_v5 = vld [vmem:[%s364_s0 + $0x10] sm:$0xff] }
   0x2   :  { %v4_v1 = vld [vmem:[%s365_s1] sm:$0xff]  ;;  %v161_v4 = vld [vmem:[%s365_s1 + $0x8] sm:$0xff]  ;;  %v164_v6 = vld [vmem:[%s365_s1 + $0x10] sm:$0xff] }
   0x3   :  { %v7_v3 = vmul.f32 %v4_v1, %v3_v0  ;;  %v16_v7 = vmul.f32 %v161_v4, %v160_v2  ;;  %v26_v8 = vmul.f32 %v164_v6, %v163_v5  ;;  %v166_v9 = vld [vmem:[%s364_s0 + $0x18] sm:$0xff]  ;;  %v169_v11 = vld [vmem:[%s364_s0 + $0x20] sm:$0xff]  ;;  %v172_v14 = vld [vmem:[%s364_s0 + $0x28] sm:$0xff] }
   0x4   :  { %v167_v10 = vld [vmem:[%s365_s1 + $0x18] sm:$0xff]  ;;  %v170_v13 = vld [vmem:[%s365_s1 + $0x20] sm:$0xff]  ;;  %v173_v15 = vld [vmem:[%s365_s1 + $0x28] sm:$0xff] }
   0x5   :  { %9 = vst [vmem:[%s366_s2] sm:$0xff] %v7_v3  ;;  %v36_v12 = vmul.f32 %v167_v10, %v166_v9  ;;  %v46_v16 = vmul.f32 %v170_v13, %v169_v11  ;;  %v56_v17 = vmul.f32 %v173_v15, %v172_v14  ;;  %v175_v18 = vld [vmem:[%s364_s0 + $0x30] sm:$0xff]  ;;  %v178_v20 = vld [vmem:[%s364_s0 + $0x38] sm:$0xff]  ;;  %v181_v23 = vld [vmem:[%s364_s0 + $0x40] sm:$0xff] }
   0x6   :  { %162 = vst [vmem:[%s366_s2 + $0x8] sm:$0xff] %v16_v7  ;;  %v176_v19 = vld [vmem:[%s365_s1 + $0x30] sm:$0xff]  ;;  %v179_v22 = vld [vmem:[%s365_s1 + $0x38] sm:$0xff]  ;;  %v182_v24 = vld [vmem:[%s365_s1 + $0x40] sm:$0xff] }
   0x7   :  { %165 = vst [vmem:[%s366_s2 + $0x10] sm:$0xff] %v26_v8  ;;  %v66_v21 = vmul.f32 %v176_v19, %v175_v18  ;;  %v76_v25 = vmul.f32 %v179_v22, %v178_v20  ;;  %v86_v26 = vmul.f32 %v182_v24, %v181_v23  ;;  %v184_v27 = vld [vmem:[%s364_s0 + $0x48] sm:$0xff]  ;;  %v187_v29 = vld [vmem:[%s364_s0 + $0x50] sm:$0xff]  ;;  %v190_v32 = vld [vmem:[%s364_s0 + $0x58] sm:$0xff] }
   0x8   :  { %168 = vst [vmem:[%s366_s2 + $0x18] sm:$0xff] %v36_v12  ;;  %v185_v28 = vld [vmem:[%s365_s1 + $0x48] sm:$0xff]  ;;  %v188_v31 = vld [vmem:[%s365_s1 + $0x50] sm:$0xff]  ;;  %v191_v33 = vld [vmem:[%s365_s1 + $0x58] sm:$0xff] }
   0x9   :  { %171 = vst [vmem:[%s366_s2 + $0x20] sm:$0xff] %v46_v16  ;;  %v96_v30 = vmul.f32 %v185_v28, %v184_v27  ;;  %v106_v34 = vmul.f32 %v188_v31, %v187_v29  ;;  %v116_v35 = vmul.f32 %v191_v33, %v190_v32  ;;  %v193_v36 = vld [vmem:[%s364_s0 + $0x60] sm:$0xff]  ;;  %v196_v38 = vld [vmem:[%s364_s0 + $0x68] sm:$0xff]  ;;  %v199_v41 = vld [vmem:[%s364_s0 + $0x70] sm:$0xff] }
   0xa   :  { %174 = vst [vmem:[%s366_s2 + $0x28] sm:$0xff] %v56_v17  ;;  %v194_v37 = vld [vmem:[%s365_s1 + $0x60] sm:$0xff]  ;;  %v197_v40 = vld [vmem:[%s365_s1 + $0x68] sm:$0xff]  ;;  %v200_v42 = vld [vmem:[%s365_s1 + $0x70] sm:$0xff] }
   0xb   :  { %177 = vst [vmem:[%s366_s2 + $0x30] sm:$0xff] %v66_v21  ;;  %v126_v39 = vmul.f32 %v194_v37, %v193_v36  ;;  %v136_v43 = vmul.f32 %v197_v40, %v196_v38  ;;  %v146_v44 = vmul.f32 %v200_v42, %v199_v41  ;;  %v202_v45 = vld [vmem:[%s364_s0 + $0x78] sm:$0xff] }
   0xc   :  { %180 = vst [vmem:[%s366_s2 + $0x38] sm:$0xff] %v76_v25  ;;  %v203_v46 = vld [vmem:[%s365_s1 + $0x78] sm:$0xff] }
   0xd   :  { %183 = vst [vmem:[%s366_s2 + $0x40] sm:$0xff] %v86_v26  ;;  %v156_v47 = vmul.f32 %v203_v46, %v202_v45 }
   0xe   :  { %186 = vst [vmem:[%s366_s2 + $0x48] sm:$0xff] %v96_v30 }
   0xf   :  { %189 = vst [vmem:[%s366_s2 + $0x50] sm:$0xff] %v106_v34 }
  0x10   :  { %192 = vst [vmem:[%s366_s2 + $0x58] sm:$0xff] %v116_v35 }
  0x11   :  { %195 = vst [vmem:[%s366_s2 + $0x60] sm:$0xff] %v126_v39 }
  0x12   :  { %198 = vst [vmem:[%s366_s2 + $0x68] sm:$0xff] %v136_v43 }
  0x13   :  { %201 = vst [vmem:[%s366_s2 + $0x70] sm:$0xff] %v146_v44 }
  0x14   :  { %204 = vst [vmem:[%s366_s2 + $0x78] sm:$0xff] %v156_v47 }

// kernel: face_attr_mlp.1
= control target key start
LH: loop header
LB: loop body
LE: loop exit
PB: predicated region body
PF: predicated region fallthrough
CT: control target
= control target key end

     0   :  { %vm63_vm0 = vcmask 457728   ;;  %s599_s1 = inlined_call_operand.vmem [shape: f32[56,128], index: 1, kind: input, shape index: {}]   ;;  %s600_s9 = inlined_call_operand.vmem [shape: f32[128,128], index: 9, kind: input, shape index: {}]   ;;  %s601_s2 = inlined_call_operand.vmem [shape: f32[1,128], index: 2, kind: input, shape index: {}]   ;;  %s602_s0 = inlined_call_operand.vmem [shape: f32[8,56], index: 0, kind: input, shape index: {}]   ;;  %s603_s3 = inlined_call_operand.vmem [shape: f32[1,128], index: 3, kind: input, shape index: {}]   ;;  %s604_s4 = inlined_call_operand.vmem [shape: f32[1,128], index: 4, kind: input, shape index: {}]   ;;  %s605_s6 = inlined_call_operand.vmem [shape: f32[1,128], index: 6, kind: input, shape index: {}]   ;;  %s606_s5 = inlined_call_operand.vmem [shape: f32[128,128], index: 5, kind: input, shape index: {}]   ;;  %s607_s7 = inlined_call_operand.vmem [shape: f32[1,128], index: 7, kind: input, shape index: {}]   ;;  %s608_s8 = inlined_call_operand.vmem [shape: f32[1,128], index: 8, kind: input, shape index: {}]   ;;  %s609_s10 = inlined_call_operand.vmem [shape: f32[8,128], index: 10, kind: output, shape index: {}]  }
   0x1   :  { %v58_v0 = vld [vmem:[%s599_s1 + $0x30] sm:$0xff]  ;;  %v57_v1 = vld [vmem:[%s599_s1 + $0x28] sm:$0xff]  ;;  %v56_v2 = vld [vmem:[%s599_s1 + $0x20] sm:$0xff] }
   0x2   :  { %76 = vmatpush.msra.mxu0 %v58_v0  ;;  %v440_v3 = vld [vmem:[%s600_s9 + $0x78] sm:$0xff]  ;;  %v446_v4 = vld [vmem:[%s600_s9 + $0x70] sm:$0xff]  ;;  %v455_v6 = vld [vmem:[%s600_s9 + $0x68] sm:$0xff] }
   0x3   :  { %89 = vmatpush.msra.mxu1 %v440_v3  ;;  %v55_v5 = vld [vmem:[%s599_s1 + $0x18] sm:$0xff]  ;;  %110 = vmatpush.msra.mxu2 %v440_v3  ;;  %v54_v7 = vld [vmem:[%s599_s1 + $0x10] sm:$0xff]  ;;  %v465_v8 = vld [vmem:[%s600_s9 + $0x60] sm:$0xff] }
   0x4   :  { %77 = vmatpush.msra.mxu0 %v57_v1  ;;  %v53_v9 = vld [vmem:[%s599_s1 + $0x8] sm:$0xff]  ;;  %v475_v10 = vld [vmem:[%s600_s9 + $0x58] sm:$0xff]  ;;  %v52_v11 = vld [vmem:[%s599_s1] sm:$0xff] }
   0x5   :  { %90 = vmatpush.msra.mxu1 %v446_v4  ;;  %111 = vmatpush.msra.mxu2 %v446_v4  ;;  %v45_v12 = vld [vmem:[%s600_s9 + $0x50] sm:$0xff]  ;;  %v51_v13 = vld [vmem:[%s602_s0] sm:$0xff]  ;;  %v44_v14 = vld [vmem:[%s600_s9 + $0x48] sm:$0xff] }
   0x6   :  { %78 = vmatpush.msra.mxu0 %v56_v2  ;;  %v43_v15 = vld [vmem:[%s600_s9 + $0x40] sm:$0xff]  ;;  %v42_v16 = vld [vmem:[%s600_s9 + $0x38] sm:$0xff]  ;;  %v41_v17 = vld [vmem:[%s600_s9 + $0x30] sm:$0xff] }
   0x7   :  { %91 = vmatpush.msra.mxu1 %v455_v6  ;;  %112 = vmatpush.msra.mxu2 %v455_v6  ;;  %v40_v18 = vld [vmem:[%s600_s9 + $0x28] sm:$0xff]  ;;  %v39_v19 = vld [vmem:[%s600_s9 + $0x20] sm:$0xff]  ;;  %v38_v20 = vld [vmem:[%s600_s9 + $0x18] sm:$0xff] }
   0x8   :  { %79 = vmatpush.msra.mxu0 %v55_v5  ;;  %v37_v21 = vld [vmem:[%s600_s9 + $0x10] sm:$0xff]  ;;  %v36_v22 = vld [vmem:[%s600_s9 + $0x8] sm:$0xff]  ;;  %v35_v23 = vld [vmem:[%s600_s9] sm:$0xff] }
   0x9   :  { %92 = vmatpush.msra.mxu1 %v465_v8  ;;  %113 = vmatpush.msra.mxu2 %v465_v8  ;;  %v359_v24 = vld [vmem:[%s601_s2] ss:$0 sm:$0xff]  ;;  %v214_v28 = vld [vmem:[%s606_s5 + $0x78] sm:$0xff]  ;;  %v213_v29 = vld [vmem:[%s606_s5 + $0x70] sm:$0xff] }
   0xa   :  { %80 = vmatpush.msra.mxu0 %v54_v7  ;;  %219 = vmatpush.msra.mxu3 %v214_v28  ;;  %v212_v31 = vld [vmem:[%s606_s5 + $0x68] sm:$0xff]  ;;  %v211_v32 = vld [vmem:[%s606_s5 + $0x60] sm:$0xff]  ;;  %v210_v34 = vld [vmem:[%s606_s5 + $0x58] sm:$0xff] }
   0xb   :  { %93 = vmatpush.msra.mxu1 %v475_v10  ;;  %114 = vmatpush.msra.mxu2 %v475_v10  ;;  %v209_v36 = vld [vmem:[%s606_s5 + $0x50] sm:$0xff]  ;;  %v208_v39 = vld [vmem:[%s606_s5 + $0x48] sm:$0xff]  ;;  %v207_v41 = vld [vmem:[%s606_s5 + $0x40] sm:$0xff] }
   0xc   :  { %81 = vmatpush.msra.mxu0 %v53_v9  ;;  %220 = vmatpush.msra.mxu3 %v213_v29  ;;  %v206_v43 = vld [vmem:[%s606_s5 + $0x38] sm:$0xff]  ;;  %v205_v44 = vld [vmem:[%s606_s5 + $0x30] sm:$0xff]  ;;  %v204_v45 = vld [vmem:[%s606_s5 + $0x28] sm:$0xff] }
   0xd   :  { %94 = vmatpush.msra.mxu1 %v45_v12  ;;  %115 = vmatpush.msra.mxu2 %v45_v12  ;;  %v203_v46 = vld [vmem:[%s606_s5 + $0x20] sm:$0xff]  ;;  %v202_v49 = vld [vmem:[%s606_s5 + $0x18] sm:$0xff]  ;;  %v201_v51 = vld [vmem:[%s606_s5 + $0x10] sm:$0xff] }
   0xe   :  { %82 = vmatpush.msra.mxu0 %v52_v11  ;;  %221 = vmatpush.msra.mxu3 %v212_v31  ;;  %v200_v53 = vld [vmem:[%s606_s5 + $0x8] sm:$0xff]  ;;  %v199_v55 = vld [vmem:[%s606_s5] sm:$0xff] }
   0xf   :  { %356 = vmatmul.msk.f32.vlgmr.msra.gmra.mxu0 %vm63_vm0, %v51_v13  ;;  %95 = vmatpush.msra.mxu1 %v44_v14  ;;  %v360_v58 = vld [vmem:[%s603_s3] ss:$0 sm:$0xff] }
  0x10   :  { %241 = vmatpush.msrb.mxu0 %v440_v3  ;;  %116 = vmatpush.msra.mxu2 %v44_v14  ;;  %v361_v61 = vld [vmem:[%s604_s4] ss:$0 sm:$0xff] }
  0x11   :  { %96 = vmatpush.msra.mxu1 %v43_v15  ;;  %222 = vmatpush.msra.mxu3 %v211_v32 }
  0x12   :  { %242 = vmatpush.msrb.mxu0 %v446_v4  ;;  %117 = vmatpush.msra.mxu2 %v43_v15 }
  0x13   :  { %97 = vmatpush.msra.mxu1 %v42_v16  ;;  %223 = vmatpush.msra.mxu3 %v210_v34 }
  0x14   :  { %243 = vmatpush.msrb.mxu0 %v455_v6  ;;  %118 = vmatpush.msra.mxu2 %v42_v16 }
  0x15   :  { %98 = vmatpush.msra.mxu1 %v41_v17  ;;  %224 = vmatpush.msra.mxu3 %v209_v36 }
  0x16   :  { %244 = vmatpush.msrb.mxu0 %v465_v8  ;;  %119 = vmatpush.msra.mxu2 %v41_v17 }
  0x17   :  { %99 = vmatpush.msra.mxu1 %v40_v18  ;;  %225 = vmatpush.msra.mxu3 %v208_v39  ;;  %v362_v39 = vld [vmem:[%s605_s6] ss:$0 sm:$0xff] }
  0x18   :  { %245 = vmatpush.msrb.mxu0 %v475_v10  ;;  %120 = vmatpush.msra.mxu2 %v40_v18 }
  0x19   :  { %100 = vmatpush.msra.mxu1 %v39_v19  ;;  %226 = vmatpush.msra.mxu3 %v207_v41 }
  0x1a   :  { %246 = vmatpush.msrb.mxu0 %v45_v12  ;;  %121 = vmatpush.msra.mxu2 %v39_v19 }
  0x1b   :  { %101 = vmatpush.msra.mxu1 %v38_v20  ;;  %227 = vmatpush.msra.mxu3 %v206_v43 }
  0x1c   :  { %247 = vmatpush.msrb.mxu0 %v44_v14  ;;  %122 = vmatpush.msra.mxu2 %v38_v20 }
  0x1d   :  { %102 = vmatpush.msra.mxu1 %v37_v21  ;;  %228 = vmatpush.msra.mxu3 %v205_v44 }
  0x1e   :  { %248 = vmatpush.msrb.mxu0 %v43_v15  ;;  %123 = vmatpush.msra.mxu2 %v37_v21 }
  0x1f   :  { %103 = vmatpush.msra.mxu1 %v36_v22  ;;  %229 = vmatpush.msra.mxu3 %v204_v45 }
  0x20   :  { %249 = vmatpush.msrb.mxu0 %v42_v16  ;;  %124 = vmatpush.msra.mxu2 %v36_v22 }
  0x21   :  { %104 = vmatpush.msra.mxu1 %v35_v23  ;;  %230 = vmatpush.msra.mxu3 %v203_v46 }
  0x22   :  { %250 = vmatpush.msrb.mxu0 %v41_v17  ;;  %125 = vmatpush.msra.mxu2 %v35_v23 }
  0x23   :  { %262 = vmatpush.msrb.mxu1 %v440_v3  ;;  %231 = vmatpush.msra.mxu3 %v202_v49 }
  0x24   :  { %251 = vmatpush.msrb.mxu0 %v40_v18 }
  0x25   :  { %263 = vmatpush.msrb.mxu1 %v446_v4  ;;  %232 = vmatpush.msra.mxu3 %v201_v51 }
  0x26   :  { %252 = vmatpush.msrb.mxu0 %v39_v19 }
  0x27   :  { %264 = vmatpush.msrb.mxu1 %v455_v6  ;;  %233 = vmatpush.msra.mxu3 %v200_v53 }
  0x28   :  { %253 = vmatpush.msrb.mxu0 %v38_v20 }
  0x29   :  { %265 = vmatpush.msrb.mxu1 %v465_v8  ;;  %234 = vmatpush.msra.mxu3 %v199_v55 }
  0x2a   :  { %254 = vmatpush.msrb.mxu0 %v37_v21 }
  0x2b   :  { %266 = vmatpush.msrb.mxu1 %v475_v10 }
  0x2c   :  { %255 = vmatpush.msrb.mxu0 %v36_v22 }
  0x2d   :  { %267 = vmatpush.msrb.mxu1 %v45_v12 }
  0x2e   :  { %256 = vmatpush.msrb.mxu0 %v35_v23 }
  0x2f   :  { %268 = vmatpush.msrb.mxu1 %v44_v14 }
  0x31   :  { %269 = vmatpush.msrb.mxu1 %v43_v15 }
  0x33   :  { %270 = vmatpush.msrb.mxu1 %v42_v16 }
  0x35   :  { %271 = vmatpush.msrb.mxu1 %v41_v17 }
  0x37   :  { %272 = vmatpush.msrb.mxu1 %v40_v18 }
  0x39   :  { %273 = vmatpush.msrb.mxu1 %v39_v19 }
  0x3b   :  { %274 = vmatpush.msrb.mxu1 %v38_v20 }
  0x3d   :  { %275 = vmatpush.msrb.mxu1 %v37_v21 }
  0x3f   :  { %276 = vmatpush.msrb.mxu1 %v36_v22 }
  0x41   :  { %277 = vmatpush.msrb.mxu1 %v35_v23 }
  0x8c   :  { %v84_v25 = vpop.f32.mrf.mxu0 }
  0x8d   :  { %v85_v26 = vadd.f32 %v359_v24, %v84_v25 }
  0x8f   :  { %105 = vmatmul.f32.vlgmr.msra.gmra.mxu1 %v85_v26  ;;  %v109_v27 = vmul.f32 %v85_v26, %v85_v26 }
  0x91   :  { %126 = vmatmul.f32.vlgmr.msra.gmra.mxu2 %v109_v27 }
 0x10c   :  { %v106_v30 = vpop.f32.mrf.mxu1 }
 0x10d   :  { %v130_v33 = vmul.f32 0.03125, %v106_v30 }
 0x10f   :  { %v132_v37 = vmul.f32 %v130_v33, %v130_v33  ;;  %v145_v57 = vsub.f32 %v85_v26, %v130_v33 }
 0x114   :  { %v127_v35 = vpop.f32.mrf.mxu2 }
 0x115   :  { %v131_v38 = vmul.f32 0.03125, %v127_v35 }
 0x117   :  { %v133_v40 = vsub.f32 %v131_v38, %v132_v37 }
 0x119   :  { %v134_v42 = vadd.f32 1e-05, %v133_v40 }
 0x11b   :  { %365 = vrsqrt.f32 %v134_v42  ;;  %vm141_vm2 = vweird.f32 %v134_v42 }
 0x121   :  { %v366_v47 = vpop.eup %365 }
 0x122   :  { %v136_v48 = vmul.f32 %v366_v47, %v134_v42  ;;  %vm142_vm1 = vweird.f32 %v366_v47 }
 0x123   :  { %vm143_vm3 = vmor %vm141_vm2, %vm142_vm1 }
 0x124   :  { %v137_v50 = vmul.f32 %v366_v47, %v136_v48 }
 0x126   :  { %v138_v52 = vmul.f32 0.5, %v137_v50 }
 0x128   :  { %v139_v54 = vsub.f32 1.5, %v138_v52 }
 0x12a   :  { %v140_v56 = vmul.f32 %v366_v47, %v139_v54 }
 0x12c   :  { %v144_v59 = vsel %vm143_vm3, %v366_v47, %v140_v56 }
 0x12d   :  { %v146_v60 = vmul.f32 %v145_v57, %v144_v59  ;;  %v363_v57 = vld [vmem:[%s607_s7] ss:$0 sm:$0xff] }
 0x12f   :  { %v150_v62 = vmul.f32 %v360_v58, %v146_v60  ;;  %v364_v60 = vld [vmem:[%s608_s8] ss:$0 sm:$0xff] }
 0x131   :  { %v154_v63 = vadd.f32 %v361_v61, %v150_v62 }
 0x133   :  { %v156_v0 = vmul.f32 0.70710677, %v154_v63  ;;  %v155_v36 = vmul.f32 0.5, %v154_v63 }
 0x135   :  { %v157_v1 = vmul.f32 %v156_v0, %v156_v0 }
 0x137   :  { %v158_v2 = vmin.f32 %v157_v1, 16.0 }
 0x139   :  { %v159_v3 = vmul.f32 2.1237322e-06, %v158_v2  ;;  %v170_v4 = vmul.f32 3.8918573e-05, %v158_v2 }
 0x13b   :  { %v160_v5 = vadd.f32 0.00028619796, %v159_v3  ;;  %v171_v6 = vadd.f32 0.001143296, %v170_v4 }
 0x13d   :  { %v161_v7 = vmul.f32 %v160_v5, %v158_v2  ;;  %v172_v8 = vmul.f32 %v171_v6, %v158_v2 }
 0x13f   :  { %v173_v9 = vadd.f32 0.014752088, %v172_v8  ;;  %v162_v10 = vadd.f32 0.0036580483, %v161_v7 }
 0x141   :  { %v174_v11 = vmul.f32 %v173_v9, %v158_v2  ;;  %v163_v13 = vmul.f32 %v162_v10, %v158_v2 }
 0x143   :  { %v175_v12 = vadd.f32 0.112945676, %v174_v11  ;;  %v164_v16 = vadd.f32 0.05243302, %v163_v13 }
 0x145   :  { %v176_v14 = vmul.f32 %v175_v12, %v158_v2  ;;  %v165_v19 = vmul.f32 %v164_v16, %v158_v2 }
 0x147   :  { %v177_v15 = vadd.f32 0.4994258, %v176_v14  ;;  %v166_v20 = vadd.f32 0.18741608, %v165_v19 }
 0x149   :  { %v178_v17 = vmul.f32 %v177_v15, %v158_v2  ;;  %v167_v22 = vmul.f32 %v166_v20, %v158_v2 }
 0x14b   :  { %v179_v18 = vadd.f32 1.0, %v178_v17  ;;  %v168_v26 = vadd.f32 1.1283791, %v167_v22 }
 0x14d   :  { %367 = vrcp.f32 %v179_v18  ;;  %v191_v25 = vand.u32 2147483648, %v179_v18  ;;  %v189_v28 = vand.u32 2147483647, %v179_v18  ;;  %vm185_vm5 = vweird.f32 %v179_v18 }
 0x14e   :  { %v169_v31 = vmul.f32 %v168_v26, %v156_v0 }
 0x14f   :  { %v192_v30 = vor.u32 1.1754944e-38, %v191_v25  ;;  %vm190_vm7 = vcmp.eq.f32.partialorder %v189_v28, 8.507059e+37 }
 0x153   :  { %v368_v21 = vpop.eup %367 }
 0x154   :  { %v181_v23 = vmul.f32 %v368_v21, %v179_v18  ;;  %vm186_vm4 = vweird.f32 %v368_v21 }
 0x155   :  { %vm187_vm6 = vmor %vm185_vm5, %vm186_vm4 }
 0x156   :  { %v182_v24 = vsub.f32 1.0, %v181_v23 }
 0x158   :  { %v183_v27 = vmul.f32 %v368_v21, %v182_v24 }
 0x15a   :  { %v184_v29 = vadd.f32 %v368_v21, %v183_v27 }
 0x15c   :  { %v188_v32 = vsel %vm187_vm6, %v368_v21, %v184_v29 }
 0x15d   :  { %v193_v33 = vsel %vm190_vm7, %v192_v30, %v188_v32 }
 0x15e   :  { %v194_v34 = vmul.f32 %v193_v33, %v169_v31 }
 0x160   :  { %v357_v35 = vclamps-f32 %v194_v34, 1.0 }
 0x162   :  { %v197_v37 = vadd.f32 1.0, %v357_v35 }
 0x164   :  { %v198_v38 = vmul.f32 %v197_v37, %v155_v36 }
 0x166   :  { %235 = vmatmul.f32.vlgmr.msra.gmra.mxu3 %v198_v38 }
 0x1e9   :  { %v236_v40 = vpop.f32.mrf.mxu3 }
 0x1ea   :  { %v237_v41 = vadd.f32 %v362_v39, %v236_v40 }
 0x1ec   :  { %257 = vmatmul.f32.vlgmr.msrb.gmra.mxu0 %v237_v41  ;;  %v261_v42 = vmul.f32 %v237_v41, %v237_v41 }
 0x1ee   :  { %278 = vmatmul.f32.vlgmr.msrb.gmra.mxu1 %v261_v42 }
 0x269   :  { %v258_v43 = vpop.f32.mrf.mxu0 }
 0x26a   :  { %v282_v44 = vmul.f32 0.03125, %v258_v43 }
 0x26b   :  { %v279_v45 = vpop.f32.mrf.mxu1 }
 0x26c   :  { %v284_v46 = vmul.f32 %v282_v44, %v282_v44  ;;  %v283_v47 = vmul.f32 0.03125, %v279_v45  ;;  %v297_v56 = vsub.f32 %v237_v41, %v282_v44 }
 0x26e   :  { %v285_v48 = vsub.f32 %v283_v47, %v284_v46 }
 0x270   :  { %v286_v49 = vadd.f32 1e-05, %v285_v48 }
 0x272   :  { %369 = vrsqrt.f32 %v286_v49  ;;  %vm293_vm9 = vweird.f32 %v286_v49 }
 0x278   :  { %v370_v50 = vpop.eup %369 }
 0x279   :  { %v288_v51 = vmul.f32 %v370_v50, %v286_v49  ;;  %vm294_vm8 = vweird.f32 %v370_v50 }
 0x27a   :  { %vm295_vm10 = vmor %vm293_vm9, %vm294_vm8 }
 0x27b   :  { %v289_v52 = vmul.f32 %v370_v50, %v288_v51 }
 0x27d   :  { %v290_v53 = vmul.f32 0.5, %v289_v52 }
 0x27f   :  { %v291_v54 = vsub.f32 1.5, %v290_v53 }
 0x281   :  { %v292_v55 = vmul.f32 %v370_v50, %v291_v54 }
 0x283   :  { %v296_v58 = vsel %vm295_vm10, %v370_v50, %v292_v55 }
 0x284   :  { %v298_v59 = vmul.f32 %v297_v56, %v296_v58 }
 0x286   :  { %v302_v61 = vmul.f32 %v363_v57, %v298_v59 }
 0x288   :  { %v306_v62 = vadd.f32 %v364_v60, %v302_v61 }
 0x28a   :  { %v308_v63 = vmul.f32 0.70710677, %v306_v62  ;;  %v307_v35 = vmul.f32 0.5, %v306_v62 }
 0x28c   :  { %v309_v0 = vmul.f32 %v308_v63, %v308_v63 }
 0x28e   :  { %v310_v1 = vmin.f32 %v309_v0, 16.0 }
 0x290   :  { %v311_v2 = vmul.f32 2.1237322e-06, %v310_v1  ;;  %v322_v3 = vmul.f32 3.8918573e-05, %v310_v1 }
 0x292   :  { %v312_v4 = vadd.f32 0.00028619796, %v311_v2  ;;  %v323_v5 = vadd.f32 0.001143296, %v322_v3 }
 0x294   :  { %v313_v6 = vmul.f32 %v312_v4, %v310_v1  ;;  %v324_v7 = vmul.f32 %v323_v5, %v310_v1 }
 0x296   :  { %v325_v8 = vadd.f32 0.014752088, %v324_v7  ;;  %v314_v9 = vadd.f32 0.0036580483, %v313_v6 }
 0x298   :  { %v326_v10 = vmul.f32 %v325_v8, %v310_v1  ;;  %v315_v12 = vmul.f32 %v314_v9, %v310_v1 }
 0x29a   :  { %v327_v11 = vadd.f32 0.112945676, %v326_v10  ;;  %v316_v15 = vadd.f32 0.05243302, %v315_v12 }
 0x29c   :  { %v328_v13 = vmul.f32 %v327_v11, %v310_v1  ;;  %v317_v18 = vmul.f32 %v316_v15, %v310_v1 }
 0x29e   :  { %v329_v14 = vadd.f32 0.4994258, %v328_v13  ;;  %v318_v19 = vadd.f32 0.18741608, %v317_v18 }
 0x2a0   :  { %v330_v16 = vmul.f32 %v329_v14, %v310_v1  ;;  %v319_v21 = vmul.f32 %v318_v19, %v310_v1 }
 0x2a2   :  { %v331_v17 = vadd.f32 1.0, %v330_v16  ;;  %v320_v25 = vadd.f32 1.1283791, %v319_v21 }
 0x2a4   :  { %371 = vrcp.f32 %v331_v17  ;;  %v343_v24 = vand.u32 2147483648, %v331_v17  ;;  %v341_v27 = vand.u32 2147483647, %v331_v17  ;;  %vm337_vm12 = vweird.f32 %v331_v17 }
 0x2a5   :  { %v321_v30 = vmul.f32 %v320_v25, %v308_v63 }
 0x2a6   :  { %v344_v29 = vor.u32 1.1754944e-38, %v343_v24  ;;  %vm342_vm14 = vcmp.eq.f32.partialorder %v341_v27, 8.507059e+37 }
 0x2aa   :  { %v372_v20 = vpop.eup %371 }
 0x2ab   :  { %v333_v22 = vmul.f32 %v372_v20, %v331_v17  ;;  %vm338_vm11 = vweird.f32 %v372_v20 }
 0x2ac   :  { %vm339_vm13 = vmor %vm337_vm12, %vm338_vm11 }
 0x2ad   :  { %v334_v23 = vsub.f32 1.0, %v333_v22 }
 0x2af   :  { %v335_v26 = vmul.f32 %v372_v20, %v334_v23 }
 0x2b1   :  { %v336_v28 = vadd.f32 %v372_v20, %v335_v26 }
 0x2b3   :  { %v340_v31 = vsel %vm339_vm13, %v372_v20, %v336_v28 }
 0x2b4   :  { %v345_v32 = vsel %vm342_vm14, %v344_v29, %v340_v31 }
 0x2b5   :  { %v346_v33 = vmul.f32 %v345_v32, %v321_v30 }
 0x2b7   :  { %v358_v34 = vclamps-f32 %v346_v33, 1.0 }
 0x2b9   :  { %v349_v36 = vadd.f32 1.0, %v358_v34 }
 0x2bb   :  { %v350_v37 = vmul.f32 %v349_v36, %v307_v35 }
 0x2bd   :  { %351 = vst [vmem:[%s609_s10] sm:$0xff] %v350_v37 }

</bundles_post_ra>
